<compile_context>
chip_gen: v7x
topology: tpu7x:2x2x1
jax: 0.10.0
libtpu: 0.0.40
codegen_flags: <defaults>
</compile_context>

<pallas_src>
import functools

import jax
import jax.numpy as jnp
import numpy as np
from jax.experimental import pallas as pl
from jax.experimental.pallas import tpu as pltpu

_HIGHEST = jax.lax.Precision.HIGHEST


def _round_up(x, m):
    return (x + m - 1) // m * m


def _cdiv(a, b):
    return (a + b - 1) // b


# ---------------------------------------------------------------------------
# Wrapper-side weight folding (tiny: O(B * n_head * Lk * D), Lk <= 8 typically)
# ---------------------------------------------------------------------------
def _fold_weights(kv, params, compute_dtype):
    """Fold the (zero-padded) reference shots into the projections, per batch.

    kv: (B, Lk, D) float32, zero-padded along the key axis.
    Returns:
      kq: (B, n_head*Lk, D)  so that  scores^T = kq[b] @ x^T  (1/sqrt(d_k) folded in)
      vw: (B, D, n_head*Lk)  so that  fc_out^T = vw[b] @ softmax_rows(scores^T)
    Row/column ordering is head-major: index = h*Lk + l.
    """
    f32 = jnp.float32
    n_head, d_k, d_v = params["n_head"], params["d_k"], params["d_v"]
    B, Lk, D = kv.shape
    wq = params["w_qkv"].astype(f32).reshape(n_head, d_k, D)      # (H, d_k, D)
    wfc = params["w_fc"].astype(f32).reshape(D, n_head, d_v)      # (D, H, d_v)
    inv_temp = 1.0 / float(np.sqrt(d_k))

    # Per-head key (== value, shared projection) features of the reference shots.
    kp = jnp.einsum("bld,hkd->bhlk", kv.astype(f32), wq, precision=_HIGHEST)
    kq = jnp.einsum("bhlk,hkd->bhld", kp, wq, precision=_HIGHEST) * inv_temp
    vw = jnp.einsum("dhk,bhlk->bdhl", wfc, kp, precision=_HIGHEST)
    return (kq.reshape(B, n_head * Lk, D).astype(compute_dtype),
            vw.reshape(B, D, n_head * Lk).astype(compute_dtype))


def _key_mask_bias(n_head, Lk, n_shots):
    """(n_head*Lk, 1) additive softmax bias: 0 for real keys, -1e30 for padding."""
    m = np.where(np.arange(Lk) < n_shots, 0.0, -1e30).astype(np.float32)
    return jnp.asarray(np.tile(m, n_head).reshape(n_head * Lk, 1))


# ---------------------------------------------------------------------------
# Kernel
# ---------------------------------------------------------------------------
def _attn_extractor_kernel(qT_ref, kq_ref, vw_ref, bias_ref, aff_ref, o_ref,
                           *, n_head, lk):
    # qT_ref:  (1, D, TQ)         query features, channels-first (queries on lanes)
    # kq_ref:  (1, n_head*Lk, D)  folded score weights (per batch, head-major rows)
    # vw_ref:  (1, D, n_head*Lk)  folded value + output-projection weights (per batch)
    # bias_ref:(n_head*Lk, 1)     additive key-padding mask (0 / -1e30)
    # aff_ref: (D, 3)             [fc bias | LayerNorm gamma | LayerNorm beta]
    # o_ref:   (1, D, TQ)
    f32 = jnp.float32
    xT = qT_ref[0]                                                   # (D, TQ)

    # All heads' attention scores in ONE MXU pass (keys on sublanes, queries on lanes).
    sT = jnp.dot(kq_ref[0], xT, preferred_element_type=f32)         # (n_head*Lk, TQ)
    sT = sT + bias_ref[...]                                          # mask padded keys

    # Grouped softmax: each head's scores occupy one Lk-row (sublane-octet) band.
    # Dropout on attn is identity at inference.
    cd = vw_ref.dtype
    bands = []
    for h in range(n_head):                                          # static, small
        band = sT[h * lk:(h + 1) * lk, :]                            # (Lk, TQ) aligned
        band = band - jnp.max(band, axis=0, keepdims=True)
        p = jnp.exp(band)
        inv = pl.reciprocal(jnp.sum(p, axis=0, keepdims=True), approx=True)
        bands.append(p * inv)
    attnT = jnp.concatenate(bands, axis=0).astype(cd)                # (n_head*Lk, TQ)

    # Values + per-head output projection, folded: ONE MXU pass for all heads.
    acc = jnp.dot(vw_ref[0], attnT, preferred_element_type=f32)      # (D, TQ)

    aff = aff_ref[...]                                               # (D, 3) f32
    out = acc + aff[:, 0:1] + xT.astype(f32)                         # fc bias + residual

    # LayerNorm over channels (axis 0).
    mean = jnp.mean(out, axis=0, keepdims=True)
    ctr = out - mean
    var = jnp.mean(ctr * ctr, axis=0, keepdims=True)
    out = ctr * jax.lax.rsqrt(var + f32(1e-5))
    out = out * aff[:, 1:2] + aff[:, 2:3]

    o_ref[0] = out.astype(o_ref.dtype)


# ---------------------------------------------------------------------------
# Wrapper
# ---------------------------------------------------------------------------
def attention_extractor(q_img, s, params, *, tq=None,
                        compute_dtype=jnp.bfloat16, out_dtype=jnp.bfloat16):
    """q_img: (B, C, H, W) NCHW feature map; s: (B, n_shots, C) reference features."""
    B, C, H, W = q_img.shape
    _, n_shots, _ = s.shape
    D = C
    Lq = H * W
    n_head, d_k, d_v = params["n_head"], params["d_k"], params["d_v"]
    # The shared projection implicitly requires d_k == d_v (PyTorch's value .view
    # would fail otherwise); the value path reuses the key projection.
    assert d_k == d_v, "MultiHeadAttentionOne's shared projection requires d_k == d_v"
    cd = compute_dtype
    f32 = jnp.float32

    # Channels-first everywhere: NCHW -> (B, D, Lq) is a pure reshape, so the big
    # activation never needs an HBM transpose on input or output.
    qT = q_img.reshape(B, D, Lq).astype(cd)

    # Replicate PyTorch: s.view(B, D, n_shots).permute(0, 2, 1) -> (B, n_shots, D).
    kv = s.reshape(B, D, n_shots).transpose(0, 2, 1).astype(f32)
    Lk = _round_up(max(n_shots, 8), 8)                 # pad keys to sublane octets
    if Lk != n_shots:
        kv = jnp.pad(kv, ((0, 0), (0, Lk - n_shots), (0, 0)))

    # Fold the tiny key/value set into the projection weights (per batch).
    kq, vw = _fold_weights(kv, params, cd)             # (B, H*Lk, D), (B, D, H*Lk)
    bias = _key_mask_bias(n_head, Lk, n_shots)         # (H*Lk, 1) f32
    aff = jnp.stack([params["b_fc"].astype(f32),
                     params["gamma"].astype(f32),
                     params["beta"].astype(f32)], axis=1)   # (D, 3) f32

    # Balanced query tiling: pick the tile count first, then the tile size.
    # The 1024 cap keeps double-buffered qT/out tiles + f32 intermediates inside
    # v7x's 64 MiB VMEM; v5e/v6e can pass a larger `tq` explicitly.
    if tq is None:
        tq = 1024
    lane_mult = 256 if tq >= 256 else 128   # 256-wide MXU on v6e/v7x; 128 ok on v5e
    n_q_tiles = max(1, _cdiv(Lq, tq))
    tq = _round_up(_cdiv(Lq, n_q_tiles), lane_mult)
    Lq_pad = n_q_tiles * tq
    if Lq_pad != Lq:
        qT = jnp.pad(qT, ((0, 0), (0, 0), (0, Lq_pad - Lq)))

    kernel = functools.partial(_attn_extractor_kernel, n_head=n_head, lk=Lk)
    nk = n_head * Lk

    out = pl.pallas_call(
        kernel,
        out_shape=jax.ShapeDtypeStruct((B, D, Lq_pad), out_dtype),
        grid_spec=pltpu.PrefetchScalarGridSpec(
            num_scalar_prefetch=0,
            grid=(B, n_q_tiles),
            in_specs=[
                pl.BlockSpec((1, D, tq), lambda b, i: (b, 0, i)),    # query tile
                pl.BlockSpec((1, nk, D), lambda b, i: (b, 0, 0)),    # folded score W
                pl.BlockSpec((1, D, nk), lambda b, i: (b, 0, 0)),    # folded value/fc W
                pl.BlockSpec((nk, 1), lambda b, i: (0, 0)),          # key-pad bias
                pl.BlockSpec((D, 3), lambda b, i: (0, 0)),           # fc bias + LN affine
            ],
            out_specs=pl.BlockSpec((1, D, tq), lambda b, i: (b, 0, i)),
        ),
        compiler_params=pltpu.CompilerParams(
            dimension_semantics=("parallel", "parallel"),
            # Explicit budget: default scoped limit is 16 MiB on v5e / 32 MiB on
            # v6e & v7x; 48 MiB fits v7x's 64 MiB physical VMEM with headroom.
            vmem_limit_bytes=48 * 1024 * 1024,
        ),
    )(qT, kq, vw, bias, aff)

    if Lq_pad != Lq:
        out = out[:, :, :Lq]
    return out.reshape(B, D, H, W)      # reshape only — no transpose needed


# ---------------------------------------------------------------------------
# Pure-JAX references (for validation)
# ---------------------------------------------------------------------------
def reference_pytorch(q_img, s, params):
    """Faithful f32 replica of the PyTorch forward (inference mode)."""
    f32 = jnp.float32
    B, D, H, W = q_img.shape
    _, n_shots, _ = s.shape
    n_head, d_k, d_v = params["n_head"], params["d_k"], params["d_v"]
    Lq = H * W

    x = q_img.reshape(B, D, Lq).transpose(0, 2, 1).astype(f32)       # (B, Lq, D)
    kv = s.reshape(B, D, n_shots).transpose(0, 2, 1).astype(f32)     # (B, n_shots, D)
    w = params["w_qkv"].astype(f32)

    qp = jnp.einsum("bld,ed->ble", x, w, precision=_HIGHEST).reshape(B, Lq, n_head, d_k)
    kp = jnp.einsum("bld,ed->ble", kv, w, precision=_HIGHEST).reshape(B, n_shots, n_head, d_k)
    vp = kp                                                           # shared projection

    logits = jnp.einsum("bqhk,blhk->bhql", qp, kp, precision=_HIGHEST) / np.sqrt(d_k)
    attn = jax.nn.softmax(logits, axis=-1)
    o = jnp.einsum("bhql,blhk->bqhk", attn, vp, precision=_HIGHEST)
    o = o.reshape(B, Lq, n_head * d_v)

    out = jnp.einsum("bqe,de->bqd", o, params["w_fc"].astype(f32), precision=_HIGHEST)
    out = out + params["b_fc"].astype(f32) + x
    mean = out.mean(-1, keepdims=True)
    var = ((out - mean) ** 2).mean(-1, keepdims=True)
    out = (out - mean) * jax.lax.rsqrt(var + 1e-5)
    out = out * params["gamma"].astype(f32) + params["beta"].astype(f32)
    return out.transpose(0, 2, 1).reshape(B, D, H, W)


def reference_folded(q_img, s, params, compute_dtype=jnp.bfloat16):
    """Replica of the kernel's folded computation.

    With compute_dtype=f32 it is algebraically identical to the PyTorch forward;
    with bf16 it mirrors the kernel's mixed precision (bf16 matmul operands,
    f32 softmax / LayerNorm / accumulation, exact reciprocal)."""
    f32 = jnp.float32
    cd = compute_dtype
    B, D, H, W = q_img.shape
    _, n_shots, _ = s.shape
    n_head = params["n_head"]
    Lq = H * W

    xT = q_img.reshape(B, D, Lq).astype(cd)
    kv = s.reshape(B, D, n_shots).transpose(0, 2, 1).astype(f32)
    Lk = _round_up(max(n_shots, 8), 8)
    if Lk != n_shots:
        kv = jnp.pad(kv, ((0, 0), (0, Lk - n_shots), (0, 0)))

    kq, vw = _fold_weights(kv, params, cd)
    bias = _key_mask_bias(n_head, Lk, n_shots)

    sT = jnp.einsum("bkd,bdq->bkq", kq, xT, precision=_HIGHEST,
                    preferred_element_type=f32) + bias[None]
    attn = jax.nn.softmax(sT.reshape(B, n_head, Lk, Lq), axis=2)
    attn = attn.reshape(B, n_head * Lk, Lq).astype(cd)
    acc = jnp.einsum("bdk,bkq->bdq", vw, attn, precision=_HIGHEST,
                     preferred_element_type=f32)

    out = acc + params["b_fc"].astype(f32)[None, :, None] + xT.astype(f32)
    mean = out.mean(axis=1, keepdims=True)
    var = ((out - mean) ** 2).mean(axis=1, keepdims=True)
    out = (out - mean) * jax.lax.rsqrt(var + 1e-5)
    out = (out * params["gamma"].astype(f32)[None, :, None]
           + params["beta"].astype(f32)[None, :, None])
    return out.reshape(B, D, H, W)


if __name__ == "__main__":
    # Small, module-consistent shapes (Lq = 256 -> two query tiles at tq=128, so the
    # grid is (B, n_tiles) = (2, 2): both TensorCores get work on v7x).
    B, D, H, W = 2, 32, 16, 16
    n_head, d_k, d_v = 2, 16, 16
    n_shots = 5

    key = jax.random.PRNGKey(0)
    k1, k2, k3, k4, k5 = jax.random.split(key, 5)

    q_img = jax.random.normal(k1, (B, D, H, W), dtype=jnp.float32)
    s = jax.random.normal(k2, (B, n_shots, D), dtype=jnp.float32)

    # Deterministic parameter init mirroring the PyTorch __init__ distributions.
    params = {
        "n_head": n_head, "d_k": d_k, "d_v": d_v,
        "w_qkv": jax.random.normal(k3, (n_head * d_k, D), jnp.float32)
                 * np.sqrt(2.0 / (D + d_k)),
        "w_fc": jax.random.normal(k4, (D, n_head * d_v), jnp.float32)
                * np.sqrt(2.0 / (D + n_head * d_v)),
        "b_fc": jax.random.uniform(k5, (D,), jnp.float32,
                                   -1.0 / np.sqrt(n_head * d_v),
                                   1.0 / np.sqrt(n_head * d_v)),
        "gamma": jnp.ones((D,), jnp.float32),
        "beta": jnp.zeros((D,), jnp.float32),
    }

    # 1) The folded formulation is algebraically equivalent to the PyTorch math.
    ref_pt = reference_pytorch(q_img, s, params)
    ref_fold32 = reference_folded(q_img, s, params, compute_dtype=jnp.float32)
    np.testing.assert_allclose(np.asarray(ref_fold32), np.asarray(ref_pt),
                               rtol=1e-3, atol=1e-3)

    # 2) The kernel matches the folded reference at its own (bf16-operand) precision.
    out = attention_extractor(q_img, s, params, tq=128)    # bf16 compute, bf16 output
    out = jax.block_until_ready(out)
    assert out.shape == (B, D, H, W)
    ref_bf16 = reference_folded(q_img, s, params, compute_dtype=jnp.bfloat16)
    np.testing.assert_allclose(np.asarray(out.astype(jnp.float32)),
                               np.asarray(ref_bf16), rtol=2e-2, atol=1e-2)

    print("KERNEL_OK")
</pallas_src>

<mosaic_0001>
module attributes {stable_mosaic.version = 11 : i64} {
  func.func @_attn_extractor_kernel(%arg0: i32, %arg1: i32, %arg2: memref<1x32x128xbf16, #tpu.memory_space<vmem>>, %arg3: memref<1x16x32xbf16, #tpu.memory_space<vmem>>, %arg4: memref<1x32x16xbf16, #tpu.memory_space<vmem>>, %arg5: memref<16x1xf32, #tpu.memory_space<vmem>>, %arg6: memref<32x3xf32, #tpu.memory_space<vmem>>, %arg7: memref<1x32x128xbf16, #tpu.memory_space<vmem>>) attributes {dimension_semantics = [#tpu.dimension_semantics<parallel>, #tpu.dimension_semantics<parallel>], iteration_bounds = array<i64: 2, 2>, scalar_prefetch = 0 : i64, scratch_operands = 0 : i64, tpu.core_type = #tpu.core_type<tc>, window_params = [{transform_indices = @transform_0, window_bounds = array<i64: 1, 32, 128>}, {transform_indices = @transform_1, window_bounds = array<i64: 1, 16, 32>}, {transform_indices = @transform_2, window_bounds = array<i64: 1, 32, 16>}, {pipeline_mode = #tpu.pipeline_mode<synchronous>, transform_indices = @transform_3, window_bounds = array<i64: 16, 1>}, {pipeline_mode = #tpu.pipeline_mode<synchronous>, transform_indices = @transform_4, window_bounds = array<i64: 32, 3>}, {transform_indices = @transform_5, window_bounds = array<i64: 1, 32, 128>}]} {
    %c0 = arith.constant 0 : index
    %c0_0 = arith.constant 0 : index
    %c0_1 = arith.constant 0 : index
    %0 = vector.load %arg2[%c0, %c0_0, %c0_1] : memref<1x32x128xbf16, #tpu.memory_space<vmem>>, vector<1x32x128xbf16>
    %1 = vector.shape_cast %0 : vector<1x32x128xbf16> to vector<32x128xbf16>
    %c0_2 = arith.constant 0 : index
    %c0_3 = arith.constant 0 : index
    %c0_4 = arith.constant 0 : index
    %2 = vector.load %arg3[%c0_2, %c0_3, %c0_4] : memref<1x16x32xbf16, #tpu.memory_space<vmem>>, vector<1x16x32xbf16>
    %3 = vector.shape_cast %2 : vector<1x16x32xbf16> to vector<16x32xbf16>
    %cst = arith.constant dense<0.000000e+00> : vector<16x128xf32>
    %4 = tpu.matmul %3, %1, %cst {dimension_numbers = #tpu.dot_dimension_numbers<[1], [0], [0], [1], [0, 0, 1, 1], [], []>} : vector<16x32xbf16>, vector<32x128xbf16>, vector<16x128xf32> -> vector<16x128xf32>
    %c0_5 = arith.constant 0 : index
    %c0_6 = arith.constant 0 : index
    %5 = vector.load %arg5[%c0_5, %c0_6] : memref<16x1xf32, #tpu.memory_space<vmem>>, vector<16x1xf32>
    %6 = vector.broadcast %5 : vector<16x1xf32> to vector<16x128xf32>
    %7 = arith.addf %4, %6 : vector<16x128xf32>
    %8 = vector.extract_strided_slice %7 {offsets = [0, 0], sizes = [8, 128], strides = [1, 1]} : vector<16x128xf32> to vector<8x128xf32>
    %cst_7 = arith.constant dense<0xFF800000> : vector<128xf32>
    %9 = vector.multi_reduction <maximumf>, %8, %cst_7 [0] : vector<8x128xf32> to vector<128xf32>
    %10 = vector.shape_cast %9 : vector<128xf32> to vector<1x128xf32>
    %11 = vector.broadcast %10 : vector<1x128xf32> to vector<8x128xf32>
    %12 = arith.subf %8, %11 : vector<8x128xf32>
    %13 = math.exp %12 : vector<8x128xf32>
    %cst_8 = arith.constant dense<0.000000e+00> : vector<128xf32>
    %14 = vector.multi_reduction <add>, %13, %cst_8 [0] : vector<8x128xf32> to vector<128xf32>
    %15 = vector.shape_cast %14 : vector<128xf32> to vector<1x128xf32>
    %16 = tpu.reciprocal %15 {approx = true} : vector<1x128xf32> -> vector<1x128xf32>
    %17 = vector.broadcast %16 : vector<1x128xf32> to vector<8x128xf32>
    %18 = arith.mulf %13, %17 : vector<8x128xf32>
    %19 = vector.extract_strided_slice %7 {offsets = [8, 0], sizes = [8, 128], strides = [1, 1]} : vector<16x128xf32> to vector<8x128xf32>
    %cst_9 = arith.constant dense<0xFF800000> : vector<128xf32>
    %20 = vector.multi_reduction <maximumf>, %19, %cst_9 [0] : vector<8x128xf32> to vector<128xf32>
    %21 = vector.shape_cast %20 : vector<128xf32> to vector<1x128xf32>
    %22 = vector.broadcast %21 : vector<1x128xf32> to vector<8x128xf32>
    %23 = arith.subf %19, %22 : vector<8x128xf32>
    %24 = math.exp %23 : vector<8x128xf32>
    %cst_10 = arith.constant dense<0.000000e+00> : vector<128xf32>
    %25 = vector.multi_reduction <add>, %24, %cst_10 [0] : vector<8x128xf32> to vector<128xf32>
    %26 = vector.shape_cast %25 : vector<128xf32> to vector<1x128xf32>
    %27 = tpu.reciprocal %26 {approx = true} : vector<1x128xf32> -> vector<1x128xf32>
    %28 = vector.broadcast %27 : vector<1x128xf32> to vector<8x128xf32>
    %29 = arith.mulf %24, %28 : vector<8x128xf32>
    %30 = tpu.concatenate %18, %29 in 0 : vector<8x128xf32>, vector<8x128xf32> -> vector<16x128xf32>
    %31 = arith.truncf %30 : vector<16x128xf32> to vector<16x128xbf16>
    %c0_11 = arith.constant 0 : index
    %c0_12 = arith.constant 0 : index
    %c0_13 = arith.constant 0 : index
    %32 = vector.load %arg4[%c0_11, %c0_12, %c0_13] : memref<1x32x16xbf16, #tpu.memory_space<vmem>>, vector<1x32x16xbf16>
    %33 = vector.shape_cast %32 : vector<1x32x16xbf16> to vector<32x16xbf16>
    %cst_14 = arith.constant dense<0.000000e+00> : vector<32x128xf32>
    %34 = tpu.matmul %33, %31, %cst_14 {dimension_numbers = #tpu.dot_dimension_numbers<[1], [0], [0], [1], [0, 0, 1, 1], [], []>} : vector<32x16xbf16>, vector<16x128xbf16>, vector<32x128xf32> -> vector<32x128xf32>
    %c0_15 = arith.constant 0 : index
    %c0_16 = arith.constant 0 : index
    %35 = vector.load %arg6[%c0_15, %c0_16] : memref<32x3xf32, #tpu.memory_space<vmem>>, vector<32x3xf32>
    %36 = vector.extract_strided_slice %35 {offsets = [0, 0], sizes = [32, 1], strides = [1, 1]} : vector<32x3xf32> to vector<32x1xf32>
    %37 = vector.broadcast %36 : vector<32x1xf32> to vector<32x128xf32>
    %38 = arith.addf %34, %37 : vector<32x128xf32>
    %39 = arith.extf %1 : vector<32x128xbf16> to vector<32x128xf32>
    %40 = arith.addf %38, %39 : vector<32x128xf32>
    %cst_17 = arith.constant dense<0.000000e+00> : vector<128xf32>
    %41 = vector.multi_reduction <add>, %40, %cst_17 [0] : vector<32x128xf32> to vector<128xf32>
    %42 = vector.shape_cast %41 : vector<128xf32> to vector<1x128xf32>
    %cst_18 = arith.constant 3.200000e+01 : f32
    %43 = vector.broadcast %cst_18 : f32 to vector<1x128xf32>
    %44 = arith.divf %42, %43 : vector<1x128xf32>
    %45 = vector.broadcast %44 : vector<1x128xf32> to vector<32x128xf32>
    %46 = arith.subf %40, %45 : vector<32x128xf32>
    %47 = arith.mulf %46, %46 : vector<32x128xf32>
    %cst_19 = arith.constant dense<0.000000e+00> : vector<128xf32>
    %48 = vector.multi_reduction <add>, %47, %cst_19 [0] : vector<32x128xf32> to vector<128xf32>
    %49 = vector.shape_cast %48 : vector<128xf32> to vector<1x128xf32>
    %cst_20 = arith.constant 3.200000e+01 : f32
    %50 = vector.broadcast %cst_20 : f32 to vector<1x128xf32>
    %51 = arith.divf %49, %50 : vector<1x128xf32>
    %cst_21 = arith.constant 9.99999974E-6 : f32
    %52 = vector.broadcast %cst_21 : f32 to vector<1x128xf32>
    %53 = arith.addf %51, %52 : vector<1x128xf32>
    %54 = math.rsqrt %53 : vector<1x128xf32>
    %55 = vector.broadcast %54 : vector<1x128xf32> to vector<32x128xf32>
    %56 = arith.mulf %46, %55 : vector<32x128xf32>
    %57 = vector.extract_strided_slice %35 {offsets = [0, 1], sizes = [32, 1], strides = [1, 1]} : vector<32x3xf32> to vector<32x1xf32>
    %58 = vector.broadcast %57 : vector<32x1xf32> to vector<32x128xf32>
    %59 = arith.mulf %56, %58 : vector<32x128xf32>
    %60 = vector.extract_strided_slice %35 {offsets = [0, 2], sizes = [32, 1], strides = [1, 1]} : vector<32x3xf32> to vector<32x1xf32>
    %61 = vector.broadcast %60 : vector<32x1xf32> to vector<32x128xf32>
    %62 = arith.addf %59, %61 : vector<32x128xf32>
    %63 = arith.truncf %62 : vector<32x128xf32> to vector<32x128xbf16>
    %c0_22 = arith.constant 0 : index
    %c0_23 = arith.constant 0 : index
    %c0_24 = arith.constant 0 : index
    %64 = vector.load %arg7[%c0_22, %c0_23, %c0_24] : memref<1x32x128xbf16, #tpu.memory_space<vmem>>, vector<1x32x128xbf16>
    %65 = vector.shape_cast %64 : vector<1x32x128xbf16> to vector<32x128xbf16>
    %66 = vector.shape_cast %63 : vector<32x128xbf16> to vector<1x32x128xbf16>
    tpu.vector_store %arg7[%c0_22, %c0_23, %c0_24], %66 {strides = array<i32>} : memref<1x32x128xbf16, #tpu.memory_space<vmem>>, vector<1x32x128xbf16>,
    return
  }
  func.func @transform_0(%arg0: i32, %arg1: i32) -> (i32, i32, i32) {
    %c0_i32 = arith.constant 0 : i32
    %c0_i32_0 = arith.constant 0 : i32
    return %arg0, %c0_i32, %arg1 : i32, i32, i32
  }
  func.func @transform_1(%arg0: i32, %arg1: i32) -> (i32, i32, i32) {
    %c0_i32 = arith.constant 0 : i32
    %c0_i32_0 = arith.constant 0 : i32
    %c0_i32_1 = arith.constant 0 : i32
    return %arg0, %c0_i32, %c0_i32_0 : i32, i32, i32
  }
  func.func @transform_2(%arg0: i32, %arg1: i32) -> (i32, i32, i32) {
    %c0_i32 = arith.constant 0 : i32
    %c0_i32_0 = arith.constant 0 : i32
    %c0_i32_1 = arith.constant 0 : i32
    return %arg0, %c0_i32, %c0_i32_0 : i32, i32, i32
  }
  func.func @transform_3(%arg0: i32, %arg1: i32) -> (i32, i32) {
    %c0_i32 = arith.constant 0 : i32
    %c0_i32_0 = arith.constant 0 : i32
    %c0_i32_1 = arith.constant 0 : i32
    return %c0_i32, %c0_i32_0 : i32, i32
  }
  func.func @transform_4(%arg0: i32, %arg1: i32) -> (i32, i32) {
    %c0_i32 = arith.constant 0 : i32
    %c0_i32_0 = arith.constant 0 : i32
    %c0_i32_1 = arith.constant 0 : i32
    return %c0_i32, %c0_i32_0 : i32, i32
  }
  func.func @transform_5(%arg0: i32, %arg1: i32) -> (i32, i32, i32) {
    %c0_i32 = arith.constant 0 : i32
    %c0_i32_0 = arith.constant 0 : i32
    return %arg0, %c0_i32, %arg1 : i32, i32, i32
  }
}

</mosaic_0001>

<bundles_post_ra>
// kernel: tpu_custom_call.1
= control target key start
LH: loop header
LB: loop body
LE: loop exit
PB: predicated region body
PF: predicated region fallthrough
CT: control target
= control target key end

     0   :  { %10 = vsyncpa [#allocation4], 0  ;;  %s1271_s0 = inlined_call_operand.vmem [shape: bf16[2,32,256], index: 0, kind: input, shape index: {}]   ;;  %s1272_s1 = inlined_call_operand.vmem [shape: bf16[2,16,32], index: 1, kind: input, shape index: {}]   ;;  %s1273_s2 = inlined_call_operand.vmem [shape: bf16[2,32,16], index: 2, kind: input, shape index: {}]   ;;  %s1274_s3 = inlined_call_operand.vmem [shape: f32[16,1], index: 3, kind: input, shape index: {}]   ;;  %s1275_s4 = inlined_call_operand.vmem [shape: f32[32,3], index: 4, kind: input, shape index: {}]   ;;  %s1276_s5 = inlined_call_operand.hbm [shape: bf16[2,32,256], index: 5, kind: output, shape index: {}]  }
   0x1   :  { %12 = vsyncpa [#allocation4 + $0x1], 0  ;;  %s1074_s18 = smov 0   ;;  %s1076_s19 = smov 0  }
   0x2   :  { %s1078_s20 = smov 0   ;;  %s1080_s21 = smov 0  }
   0x3   :  { %s1082_s22 = smov 0   ;;  %s1084_s23 = smov 0  }
   0x4   :  { %s1086_s24 = smov 0   ;;  %s1088_s25 = smov 0  }
   0x5 LB: > { %s769_s26 = sadd.s32 4294967295, %s1033_s25   ;;  %s770_s27 = sadd.s32 4294967294, %s1033_s25   ;;  %s1033_s25 = sphi %s1088_s25, %s18_s25   ;;  %s1029_s24 = sphi %s1086_s24, %s1288_s24   ;;  %s1025_s23 = sphi %s1084_s23, %s1287_s23   ;;  %s1021_s22 = sphi %s1082_s22, %s1286_s22   ;;  %s1017_s21 = sphi %s1080_s21, %s1285_s21   ;;  %s1013_s20 = sphi %s1078_s20, %s1284_s20   ;;  %s1009_s19 = sphi %s1076_s19, %s1283_s19   ;;  %s1005_s18 = sphi %s1074_s18, %s1282_s18  }
   0x6   : > { %s27_s28 = sadd.s32 1, %s1025_s23  ;;  %s30_s29 = sadd.s32 1, %s1029_s24 }
   0x7   : > { %p28_p0 = scmp.ge.s32.totalorder %s27_s28, 2  ;;  %p46_p1 = scmp.ne.s32.totalorder %s1013_s20, %s1009_s19 }
   0x8   : > { %p47_p2 = scmp.eq.s32.totalorder %s1033_s25, 0  ;;  %p172_p5 = scmp.eq.s32.totalorder %s769_s26, 3 }
   0x9   : > { %s1290_s28 = smov (%p28_p0, %s27_s28), 0  ;;  %s1292_s29 = smov (!%p28_p0, %s30_s29), %s1029_s24 }
   0xa   : > { %s35_s30 = ssub.s32 %s1025_s23, %s1290_s28  ;;  %p1126_p3 = por %p47_p2, %p46_p1 }
   0xb   : > { %p32_p4 = scmp.ge.s32.totalorder %s1292_s29, 2  ;;  %p177_p6 = scmp.ne.s32.totalorder %s1009_s19, %s1005_s18 }
   0xc   : > { %p178_p7 = scmp.eq.s32.totalorder %s770_s27, 3  ;;  %p1134_p8 = por %p172_p5, %p46_p1 }
   0xd   : > { %s1294_s29 = smov (%p32_p4, %s1292_s29), 0  ;;  %s39_s11 = sadd.s32 1, %s1013_s20 }
   0xe   : > { %p1138_p9 = por %p178_p7, %p177_p6  ;;  %s34_s9 = ssub.s32 %s1029_s24, %s1294_s29 }
   0xf   : > { %s36_s10 = sor.u32 %s35_s30, %s34_s9  ;;  %p772_p11 = scmp.ge.s32.totalorder %s1033_s25, 4 }
  0x10   : > { %p37_p10 = scmp.eq.s32.totalorder %s36_s10, 0 }
  0x11   : > { %200 = sbr.rel (%p772_p11) target bundleno = 32 (0x20), region = 24 }
  0x12   : > { %s1146_s12 = scalar_select %p37_p10, %s1013_s20, %s39_s11  }
  0x18   : > { %203 = sbr.rel (!%p1126_p3) target bundleno = 32 (0x20), region = 28  ;;  %s205_s13 = sand.u32 (%p1126_p3), 1, %s1013_s20  }
  0x19   : > { %s774_s14 = sshll.u32 (%p1126_p3), %s1029_s24, 3  ;;  %s773_s15 = sshll.u32 (%p1126_p3), %s205_s13, 4 }
  0x1a   : > { %s209_s16 = sadd.s32 (%p1126_p3), %s1025_s23, %s774_s14  ;;  %s207_s9 = scalar_lea.vmem (%p1126_p3), [#allocation2], %s773_s15 }
  0x1b   : > { %s775_s17 = sshll.u32 (%p1126_p3), %s209_s16, 2 }
  0x1c   : > { %s211_s30 = scalar_lea.vmem (%p1126_p3), %s1271_s0, %s775_s17 }
  0x1d   : > { %v227_v0 = vld [vmem:[%s211_s30] sm:$0xf] (%p1126_p3)  ;;  %v229_v1 = vld [vmem:[%s211_s30 + $0x8] sm:$0xf] (%p1126_p3)  ;;  %v231_v2 = vld [vmem:[%s211_s30 + $0x10] sm:$0xf] (%p1126_p3) }
  0x1e   : > { %228 = vst [vmem:[%s207_s9] sm:$0xf] (%p1126_p3), %v227_v0  ;;  %230 = vst [vmem:[%s207_s9 + $0x4] sm:$0xf] (%p1126_p3), %v229_v1  ;;  %v233_v3 = vld [vmem:[%s211_s30 + $0x18] sm:$0xf] (%p1126_p3) }
  0x1f   : > { %232 = vst [vmem:[%s207_s9 + $0x8] sm:$0xf] %v231_v2  ;;  %234 = vst [vmem:[%s207_s9 + $0xc] sm:$0xf] %v233_v3 }
  0x20 PF: > { %p776_p12 = scmp.ge.s32.totalorder %s1033_s25, 1  ;;  %p280_p13 = scmp.lt.s32.totalorder %s1033_s25, 5 }
  0x22   : > { %p281_p0 = pnand %p776_p12, %p280_p13 }
  0x23   : > { %s1277_s6 = sand.u32 (!%p281_p0), 1, %s1009_s19   ;;  %p324_p1 = scmp.lt.s32.totalorder (!%p281_p0), %s1021_s22, 1  ;;  %v1035_v4 = vmov (!%p281_p0), 0.0   ;;  %vm1036_vm0 = vmmov (!%p281_p0), 0   ;;  %v341_v5 = vld [vmem:[%s1274_s3] sm:$0xff] (!%p281_p0)  ;;  %v1037_v6 = vmov (!%p281_p0), 0  }
  0x24   : > { %284 = sbr.rel (%p281_p0) target bundleno = 622 (0x26e), region = 77  ;;  %823 = vmatprep.subr.bf16.mxu0 (!%p281_p0), %v1035_v4  ;;  %s1163_s10 = sshll.u32 (!%p281_p0), %s1277_s6, 4  ;;  %827 = vmatprep.mubr.msk.bf16.mxu0 (!%p281_p0), %vm1036_vm0, %v1035_v4  ;;  %v342_v9 = vld [vmem:[%s1274_s3 + $0x8] sm:$0xff] (!%p281_p0)  ;;  %v456_v10 = vld [vmem:[%s1275_s4 + $0x10] sm:$0xff] (!%p281_p0)  ;;  %vm370_vm1 = vcmask (!%p281_p0), 261120   ;;  %vm488_vm2 = vcmask (!%p281_p0), 130048  }
  0x25   : > { %916 = vset.pattern.permute.xlu0 (!%p281_p0), %v1037_v6  ;;  %917 = vset.pattern.permute.xlu1 (!%p281_p0), %v1037_v6  ;;  %s289_s14 = scalar_lea.vmem (!%p281_p0), [#allocation2], %s1163_s10  ;;  %v454_v13 = vld [vmem:[%s1275_s4] sm:$0xff] (!%p281_p0)  ;;  %v1038_v14 = vmov (!%p281_p0), 1   ;;  %v455_v15 = vld [vmem:[%s1275_s4 + $0x8] sm:$0xff] (!%p281_p0)  ;;  %v457_v16 = vld [vmem:[%s1275_s4 + $0x18] sm:$0xff] (!%p281_p0)  ;;  %v1039_v17 = vmov (!%p281_p0), 2  }
  0x26   : > { %v1169_v7 = vld [vmem:[%s289_s14] sm:$0xff] (!%p281_p0)   ;;  %v1171_v8 = vld [vmem:[%s289_s14 + $0x8] sm:$0xff] (!%p281_p0)   ;;  %345 = vperm.xlu0 (!%p281_p0), %916, %v341_v5   ;;  %460 = vperm.xlu1 (!%p281_p0), %917, %v454_v13  }
  0x27   : > { %824 = vmatpush3.bf16.msra.mxu0 (!%p281_p0), %v1169_v7  ;;  %v544_v0 = vunpack.c.l.bf16 (!%p281_p0), %v1169_v7  ;;  %v545_v3 = vunpack.c.h.bf16 (!%p281_p0), %v1169_v7 }
  0x28   : > { %825 = vmatprep.subr.bf16.mxu0 (!%p281_p0), %v1035_v4 }
  0x2a   : > { %350 = vperm.xlu0 (!%p281_p0), %916, %v342_v9   ;;  %465 = vperm.xlu1 (!%p281_p0), %917, %v455_v15  }
  0x2b   : > { %s325_s15 = scalar_select %p324_p1, %s1021_s22, 1  ;;  %826 = vmatpush3.bf16.msra.mxu0 %v1171_v8 }
  0x2d   : > { %s800_s26 = sshll.u32 %s325_s15, 3  ;;  %s801_s14 = sshll.u32 %s325_s15, 4 }
  0x2e   : > { %s328_s9 = scalar_lea.vmem %s1272_s1, %s800_s26  ;;  %470 = vperm.xlu0 %916, %v456_v10   ;;  %s1188_s6 = scalar_lea.vmem %s1273_s2, %s801_s14  ;;  %475 = vperm.xlu1 %917, %v457_v16  }
  0x2f   : > { %v924_v11 = vld [vmem:[%s328_s9] sm:$0xff]   ;;  %v926_v61 = vld [vmem:[%s1188_s6 + $0x8] sm:$0xff]   ;;  %s323_s14 = scalar_lea.vmem [#allocation3], %s1163_s10  ;;  %s1281_s26 = sand.u32 1, %s1009_s19  }
  0x30   : > { %828 = vmatmul.mubr.msk.bf16.vlgmr.msra.gmra.mrb[0].mxu0 %vm370_vm1, %v924_v11  ;;  %v925_v12 = vld [vmem:[%s1188_s6] sm:$0xff]   ;;  %v546_v11 = vunpack.c.l.bf16 %v1171_v8  ;;  %s796_s6 = sshll.u32 %s1021_s22, 3  ;;  %s662_s16 = sshll.u32 %s323_s14, 4  ;;  %s1210_s16 = int_to_ptr.vmem [resolvable:$true] %s662_s16 }
  0x31   : > { %833 = vmatprep.mubr.msk.bf16.mxu1 %vm488_vm2, %v925_v12  ;;  %s659_s13 = sadd.s32 %s1017_s21, %s796_s6  ;;  %s1219_s27 = scalar_lea.sflag [#allocation4], %s1281_s26 }
  0x32   : > { %918 = vset.pattern.permute.xlu0 %v1038_v14  ;;  %919 = vset.pattern.permute.xlu1 %v1038_v14  ;;  %s797_s17 = sshll.u32 %s659_s13, 6  ;;  %s939_s30 = scalar_lea.vmem %s1210_s16, 256 }
  0x33   : > { %588 = vperm.xlu0 %918, %v454_v13   ;;  %592 = vperm.xlu1 %919, %v455_v15   ;;  %s1215_s10 = scalar_lea.hbm %s1276_s5, %s797_s17  ;;  %p940_p2 = scmp.ne.s32.totalorder %s1210_s16, %s939_s30 }
  0x34   : > { %s1040_s9 = smov [#allocation3]  }
  0x35   : > { %p941_p3 = pnand %p940_p2, %p1134_p8  ;;  %s943_s15 = sshll.u32 %s1040_s9, 4  ;;  %s944_s15 = int_to_ptr.vmem [resolvable:$false] %s943_s15 }
  0x36   : > { %s945_s11 = scalar_lea.vmem %s944_s15, 512  ;;  %p946_p5 = scmp.lt.s32.totalorder %s1210_s16, %s944_s15 }
  0x37   : > { %600 = vperm.xlu0 %918, %v457_v16   ;;  %596 = vperm.xlu1 %919, %v456_v10   ;;  %p942_p4 = pneg %p941_p3  ;;  %p947_p6 = scmp.lt.s32.totalorder %s945_s11, %s939_s30 }
  0x39   : > { %p948_p7 = por %p947_p6, %p946_p5 }
  0x3b   : > { %921 = vset.pattern.permute.xlu0 %v1039_v17  ;;  %920 = vset.pattern.permute.xlu1 %v1039_v17  ;;  %p949_p10 = pnand %p948_p7, %p942_p4 }
  0x3c   : > { %612 = vperm.xlu0 %921, %v455_v15   ;;  %608 = vperm.xlu1 %920, %v454_v13  }
  0x40   : > { %616 = vperm.xlu1 %920, %v456_v10  }
  0x44   : > { %620 = vperm.xlu1 %920, %v457_v16   ;;  %v547_v16 = vunpack.c.h.bf16 %v1171_v8 }
  0xa5   : > { %v346_v18 = vpop.permute.xlu0 %345  ;;  %v461_v62 = vpop.permute.xlu1 %460 }
  0xa9   : > { %v351_v22 = vpop.permute.xlu0 %350  ;;  %v466_v63 = vpop.permute.xlu1 %465 }
  0xad   : > { %v471_v6 = vpop.permute.xlu0 %470  ;;  %v476_v14 = vpop.permute.xlu1 %475 }
 0x103   : > { %v408_v19 = vpop.f32.mrb[0].mxu0 }
 0x104   : > { %v409_v20 = vadd.f32 %v408_v19, %v346_v18  ;;  %v829_v21 = vpop.f32.mrb[1].mxu0 }
 0x105   : > { %v411_v23 = vpop.f32.mrb[2].mxu0 }
 0x106   : > { %v415_v24 = vrot.slane %v409_v20, 4  ;;  %v412_v25 = vadd.f32 %v411_v23, %v351_v22  ;;  %v830_v26 = vpop.f32.mrb[3].mxu0 }
 0x108   : > { %v416_v27 = vmax.f32 %v409_v20, %v415_v24  ;;  %v432_v28 = vrot.slane %v412_v25, 4 }
 0x10a   : > { %v417_v29 = vrot.slane %v416_v27, 2  ;;  %v433_v30 = vmax.f32 %v412_v25, %v432_v28 }
 0x10c   : > { %v418_v31 = vmax.f32 %v416_v27, %v417_v29  ;;  %v434_v32 = vrot.slane %v433_v30, 2 }
 0x10e   : > { %v419_v33 = vrot.slane %v418_v31, 1  ;;  %v435_v34 = vmax.f32 %v433_v30, %v434_v32 }
 0x110   : > { %v420_v35 = vmax.f32 %v418_v31, %v419_v33  ;;  %v436_v36 = vrot.slane %v435_v34, 1 }
 0x112   : > { %v421_v37 = vsub.f32 %v409_v20, %v420_v35  ;;  %v437_v38 = vmax.f32 %v435_v34, %v436_v36 }
 0x114   : > { %v422_v39 = vmul.f32 1.442695, %v421_v37  ;;  %v438_v40 = vsub.f32 %v412_v25, %v437_v38 }
 0x116   : > { %929 = vpow2.f32 %v422_v39  ;;  %v439_v41 = vmul.f32 1.442695, %v438_v40 }
 0x118   : > { %931 = vpow2.f32 %v439_v41 }
 0x120   : > { %v930_v42 = vpop.eup %929 }
 0x121   : > { %v424_v43 = vrot.slane %v930_v42, 4 }
 0x122   : > { %v932_v44 = vpop.eup %931 }
 0x123   : > { %v425_v45 = vadd.f32 %v930_v42, %v424_v43  ;;  %v441_v46 = vrot.slane %v932_v44, 4 }
 0x125   : > { %v426_v47 = vrot.slane %v425_v45, 2  ;;  %v442_v48 = vadd.f32 %v932_v44, %v441_v46 }
 0x127   : > { %v427_v49 = vadd.f32 %v426_v47, %v425_v45  ;;  %v443_v50 = vrot.slane %v442_v48, 2 }
 0x129   : > { %v428_v51 = vrot.slane %v427_v49, 1  ;;  %v444_v52 = vadd.f32 %v443_v50, %v442_v48  ;;  %v589_v50 = vpop.permute.xlu0 %588 }
 0x12b   : > { %v429_v53 = vadd.f32 %v428_v51, %v427_v49  ;;  %v445_v54 = vrot.slane %v444_v52, 1 }
 0x12d   : > { %933 = vrcp.f32 %v429_v53  ;;  %v446_v55 = vadd.f32 %v445_v54, %v444_v52  ;;  %v601_v52 = vpop.permute.xlu0 %600 }
 0x12f   : > { %935 = vrcp.f32 %v446_v55 }
 0x137   : > { %v934_v56 = vpop.eup %933 }
 0x138   : > { %v431_v58 = vmul.f32 %v934_v56, %v930_v42  ;;  %v593_v42 = vpop.permute.xlu1 %592 }
 0x139   : > { %v936_v57 = vpop.eup %935 }
 0x13a   : > { %v448_v59 = vmul.f32 %v936_v57, %v932_v44 }
 0x13c   : > { %v449_v60 = vpack.c.bf16 %v448_v59, %v431_v58  ;;  %v597_v47 = vpop.permute.xlu1 %596  ;;  %v613_v58 = vpop.permute.xlu0 %612 }
 0x13e   : > { %831 = vmatprep.subr.bf16.mxu1 %v449_v60 }
 0x13f   : > { %832 = vmatpush3.bf16.msra.mxu1 %v449_v60 }
 0x140   : > { %v609_v49 = vpop.permute.xlu1 %608 }
 0x142   : > { %834 = vmatmul.mubr.msk.bf16.vlgmr.msra.gmra.mrb[0].mxu1 %vm488_vm2, %v926_v61 }
 0x144   : > { %v617_v51 = vpop.permute.xlu1 %616 }
 0x215   : > { %v835_v1 = vpop.f32.mrb[0].mxu1 }
 0x216   : > { %v529_v2 = vpop.f32.mrb[1].mxu1  ;;  %v538_v10 = vadd.f32 %v835_v1, %v471_v6 }
 0x217   : > { %v530_v4 = vadd.f32 %v529_v2, %v461_v62  ;;  %v836_v5 = vpop.f32.mrb[2].mxu1 }
 0x218   : > { %v532_v9 = vpop.f32.mrb[3].mxu1  ;;  %v541_v15 = vadd.f32 %v836_v5, %v476_v14  ;;  %v550_v18 = vadd.f32 %v546_v11, %v538_v10 }
 0x219   : > { %v548_v12 = vadd.f32 %v544_v0, %v530_v4  ;;  %v533_v13 = vadd.f32 %v532_v9, %v466_v63  ;;  %v621_v63 = vpop.permute.xlu1 %620 }
 0x21a   : > { %v551_v20 = vadd.f32 %v547_v16, %v541_v15 }
 0x21b   : > { %v549_v17 = vadd.f32 %v545_v3, %v533_v13 }
 0x21d   : > { %v552_v19 = vadd.f32 %v549_v17, %v548_v12 }
 0x21f   : > { %v553_v21 = vadd.f32 %v552_v19, %v550_v18 }
 0x221   : > { %v554_v22 = vadd.f32 %v553_v21, %v551_v20 }
 0x223   : > { %v555_v7 = vrot.slane %v554_v22, 4 }
 0x225   : > { %v556_v23 = vadd.f32 %v555_v7, %v554_v22 }
 0x227   : > { %v557_v24 = vrot.slane %v556_v23, 2 }
 0x229   : > { %v558_v25 = vadd.f32 %v557_v24, %v556_v23 }
 0x22b   : > { %v559_v26 = vrot.slane %v558_v25, 1 }
 0x22d   : > { %v560_v27 = vadd.f32 %v559_v26, %v558_v25 }
 0x22f   : > { %v562_v28 = vmul.f32 0.03125, %v560_v27 }
 0x231   : > { %v565_v29 = vsub.f32 %v550_v18, %v562_v28  ;;  %v566_v30 = vsub.f32 %v551_v20, %v562_v28  ;;  %v563_v31 = vsub.f32 %v548_v12, %v562_v28  ;;  %v564_v32 = vsub.f32 %v549_v17, %v562_v28 }
 0x233   : > { %v567_v33 = vmul.f32 %v563_v31, %v563_v31  ;;  %v568_v34 = vmul.f32 %v564_v32, %v564_v32  ;;  %v569_v8 = vmul.f32 %v565_v29, %v565_v29  ;;  %v570_v36 = vmul.f32 %v566_v30, %v566_v30 }
 0x235   : > { %v571_v35 = vadd.f32 %v568_v34, %v567_v33 }
 0x237   : > { %v572_v37 = vadd.f32 %v571_v35, %v569_v8 }
 0x239   : > { %v573_v38 = vadd.f32 %v572_v37, %v570_v36 }
 0x23b   : > { %v574_v39 = vrot.slane %v573_v38, 4 }
 0x23d   : > { %v575_v40 = vadd.f32 %v574_v39, %v573_v38 }
 0x23f   : > { %v576_v41 = vrot.slane %v575_v40, 2 }
 0x241   : > { %v577_v43 = vadd.f32 %v576_v41, %v575_v40 }
 0x243   : > { %v578_v44 = vrot.slane %v577_v43, 1 }
 0x245   : > { %v579_v45 = vadd.f32 %v578_v44, %v577_v43 }
 0x247   : > { %v580_v46 = vmul.f32 0.03125, %v579_v45 }
 0x249   : > { %v581_v48 = vadd.f32 1e-05, %v580_v46 }
 0x24b   : > { %937 = vrsqrt.f32 %v581_v48 }
 0x255   : > { %v938_v53 = vpop.eup %937 }
 0x256   : > { %v584_v54 = vmul.f32 %v938_v53, %v564_v32  ;;  %v585_v55 = vmul.f32 %v938_v53, %v565_v29  ;;  %v583_v56 = vmul.f32 %v938_v53, %v563_v31  ;;  %v586_v57 = vmul.f32 %v938_v53, %v566_v30 }
 0x258   : > { %v604_v59 = vmul.f32 %v593_v42, %v584_v54  ;;  %v605_v60 = vmul.f32 %v597_v47, %v585_v55  ;;  %v603_v61 = vmul.f32 %v589_v50, %v583_v56  ;;  %v606_v62 = vmul.f32 %v601_v52, %v586_v57 }
 0x25a   : > { %v623_v0 = vadd.f32 %v609_v49, %v603_v61  ;;  %v625_v1 = vadd.f32 %v617_v51, %v605_v60  ;;  %v626_v2 = vadd.f32 %v621_v63, %v606_v62  ;;  %v624_v3 = vadd.f32 %v613_v58, %v604_v59 }
 0x25c   : > { %v814_v4 = vpack.c.bf16 %v626_v2, %v625_v1  ;;  %v809_v5 = vpack.c.bf16 %v624_v3, %v623_v0 }
 0x25e   : > { %816 = vst [vmem:[%s323_s14 + $0x8] sm:$0xff] %v814_v4   ;;  %810 = vst [vmem:[%s323_s14] sm:$0xff] %v809_v5  }
 0x25f   : > { %952 = shalt.err (!%p949_p10)
}
 0x260   : > { %s953_s6 = scalar_lea.hbm %s1215_s10, 256  ;;  %s957_s17 = scalar_lea.hbm %s1276_s5, 1024 }
 0x261   : > { %p954_p11 = scmp.ne.s32.totalorder %s1215_s10, %s953_s6  ;;  %p958_p0 = scmp.lt.u32.totalorder %s1215_s10, %s1276_s5 }
 0x262   : > { %p959_p1 = scmp.lt.u32.totalorder %s957_s17, %s953_s6  ;;  %p961_p3 = scmp.lt.u32.totalorder %s953_s6, %s1215_s10 }
 0x263   : > { %p955_p12 = pnand %p954_p11, %p1134_p8 }
 0x264   : > { %p960_p2 = por %p959_p1, %p958_p0 }
 0x265   : > { %p956_p13 = pneg %p955_p12 }
 0x266   : > { %p962_p4 = por %p961_p3, %p960_p2 }
 0x268   : > { %p963_p5 = pnand %p962_p4, %p956_p13 }
 0x26a   : > { %966 = shalt.err (!%p963_p5)
}
 0x26b   : > { %s1041_s26 = smov 64   ;;  %s1042_s30 = smov 128  }
 0x26c   : > { %s1043_s9 = smov 4  }
 0x26d   : > { %837 = dma.vmem_to_hbm [thread:$0]  (%p1134_p8), %s1210_s16, 256, %s1215_s10, %s1219_s27, %s1041_s26, %s1042_s30, %s1043_s9  }
 0x26e PF: > { %p843_p6 = scmp.ge.s32.totalorder %s1033_s25, 2  ;;  %s677_s15 = sand.u32 1, %s1005_s18  }
 0x26f   : > { %s678_s11 = scalar_lea.sflag [#allocation4], %s677_s15 }
 0x270   : > { %p840_p7 = pnand %p843_p6, %p1138_p9 }
 0x272   : > { %1000 = dma.done.wait (!%p840_p7), %s678_s11, 256  }
 0x273   : > { %1002 = vsyncadd (!%p840_p7), %s678_s11, 4294967040  ;;  %s18_s25 = sadd.s32 1, %s1033_s25   ;;  %s1282_s18 = smov %s1009_s19 }
 0x274   : > { %p15_p10 = scmp.ge.s32.totalorder %s18_s25, 6   ;;  %s1283_s19 = smov %s1013_s20 }
 0x275   : > { %s1284_s20 = smov %s1146_s12  ;;  %s1285_s21 = smov %s1025_s23 }
 0x276   : > { %s1286_s22 = smov %s1029_s24  ;;  %s1287_s23 = smov %s1290_s28 }
 0x277   : > { %s1288_s24 = smov %s1294_s29  ;;  %17 = sbr.rel (!%p15_p10) target bundleno = 5 (0x5), region = 127 }
 0x27e   :  { %683 = vsyncpa [#allocation4], 1 }
 0x27f   :  { %685 = vsyncpa [#allocation4 + $0x1], 1 }

</bundles_post_ra>
